<compile_context>
chip_gen: v7x
topology: tpu7x:2x2x1
jax: 0.10.0
libtpu: 0.0.40
codegen_flags: <defaults>
</compile_context>

<pallas_src>
import functools

import jax
import jax.numpy as jnp
from jax.experimental import pallas as pl
from jax.experimental.pallas import tpu as pltpu


def _projection_kernel(x_ref, w_ref, b_ref, mask_ref, m_ref, logs_ref, *,
                       out_channels):
    # x_ref:    (1, C_hid, tt)      compute dtype (bf16 on the fast path)
    # w_ref:    (2*C_out, C_hid)    compute dtype (constant across the grid)
    # b_ref:    (2*C_out, 1)        float32
    # mask_ref: (1, 1, tt)          compute dtype (0/1 values, exact in bf16)
    # m_ref:    (1, C_out, tt)      out dtype
    # logs_ref: (1, C_out, tt)      out dtype
    x = x_ref[0]                                   # (C_hid, tt)
    mask = mask_ref[0].astype(jnp.float32)         # (1, tt) -> bcast over rows

    # Single fused MXU matmul with f32 accumulation, then f32 bias + mask.
    stats = jnp.dot(w_ref[...], x, preferred_element_type=jnp.float32)
    stats = (stats + b_ref[...]) * mask            # (2*C_out, tt), f32

    # Static row slices; sublane-tile aligned when out_channels % 8 == 0.
    m_ref[0] = stats[:out_channels].astype(m_ref.dtype)
    logs_ref[0] = stats[out_channels:].astype(logs_ref.dtype)


def _vmem_budget():
    """Generation-aware (vmem_limit_bytes, stream_budget_bytes)."""
    cap = 64 * 1024 * 1024          # conservative fallback (v7x per-core VMEM)
    try:
        info = pltpu.get_tpu_info()
        cap = int(getattr(info, "vmem_capacity_bytes", cap))
    except Exception:
        pass
    # Leave headroom for compiler-internal scratch / neighbouring fusions:
    #   64 MiB parts (v7x)      -> 48 MiB scoped limit
    #   128 MiB parts (v5e/v6e) -> 96 MiB scoped limit
    limit = max(32 * 1024 * 1024, min(cap - 16 * 1024 * 1024, 96 * 1024 * 1024))
    # The tile-picker's per-column cost already includes double-buffering, so
    # half the limit as stream budget leaves 2x headroom for weights + scratch.
    return limit, limit // 2


def _pick_time_tile(T, c_hid, c_out, in_bytes, out_bytes,
                    stream_budget_bytes, max_tile=8192):
    """Largest multiple-of-128 time tile whose double-buffered streams fit."""
    # Per time column we stream (all double-buffered by the Pallas pipeline):
    # x (c_hid*in_bytes), mask (in_bytes) and two output halves.
    per_col = 2 * (c_hid * in_bytes + in_bytes + 2 * c_out * out_bytes)
    tt = (stream_budget_bytes // per_col) // 128 * 128
    tt = max(128, min(tt, max_tile))
    if T <= tt:
        return T            # single full-extent tile (block dim == array dim)
    return tt


def projection(x, x_mask, weight, bias, out_channels, *,
               compute_dtype=jnp.bfloat16, out_dtype=None, time_tile=None):
    """Pallas implementation of Projection.forward.

    Args:
      x:       (B, hidden_channels, T)
      x_mask:  (B, 1, T)  (1.0 valid, 0.0 padding)
      weight:  (2*out_channels, hidden_channels)  Conv1d k=1 kernel, squeezed
      bias:    (2*out_channels,)
      out_channels: int
      compute_dtype: matmul input dtype (bf16 = MXU fast path; float32 for
        strict parity with the PyTorch f32 Conv1d). Accumulation is always f32.
      out_dtype: output dtype (default: x.dtype). bf16 halves output HBM bytes.
      time_tile: optional override of the time-axis tile size.

    Returns:
      (m_p, logs_p), each (B, out_channels, T), dtype out_dtype.
    """
    B, C_hid, T = x.shape
    if out_dtype is None:
        out_dtype = x.dtype
    in_bytes = jnp.dtype(compute_dtype).itemsize
    out_bytes = jnp.dtype(out_dtype).itemsize

    vmem_limit, stream_budget = _vmem_budget()

    if time_tile is None:
        tt = _pick_time_tile(T, C_hid, out_channels, in_bytes, out_bytes,
                             stream_budget)
        # v7x has 2 TensorCores: at batch 1 make sure the time grid has at
        # least 2 steps so both cores get work (harmless on v5e/v6e).
        if B == 1 and T >= 256 and tt >= T:
            tt = max(128, ((T // 2) // 128) * 128)
    else:
        tt = min(int(time_tile), T)

    grid_t = pl.cdiv(T, tt)   # ragged tail handled by Pallas; no pad/crop copies

    # Fused weight / bias (no per-half split; the kernel slices the f32 result).
    w = weight.astype(compute_dtype)                             # (2*C_out, C_hid)
    b = bias.reshape(2 * out_channels, 1).astype(jnp.float32)    # (2*C_out, 1)
    x_c = x.astype(compute_dtype)
    mask_c = x_mask.astype(compute_dtype)      # 0/1 -> exact in bf16

    kernel = functools.partial(_projection_kernel, out_channels=out_channels)

    cost = pl.CostEstimate(
        flops=2 * B * (2 * out_channels) * C_hid * T,
        transcendentals=0,
        bytes_accessed=(x_c.size * in_bytes + mask_c.size * in_bytes
                        + w.size * in_bytes + b.size * 4
                        + 2 * B * out_channels * T * out_bytes),
    )

    m_p, logs_p = pl.pallas_call(
        kernel,
        out_shape=(
            jax.ShapeDtypeStruct((B, out_channels, T), out_dtype),
            jax.ShapeDtypeStruct((B, out_channels, T), out_dtype),
        ),
        grid_spec=pltpu.PrefetchScalarGridSpec(
            num_scalar_prefetch=0,
            grid=(B, grid_t),
            in_specs=[
                pl.BlockSpec((1, C_hid, tt), lambda bi, ti: (bi, 0, ti)),          # x
                pl.BlockSpec((2 * out_channels, C_hid), lambda bi, ti: (0, 0)),    # W
                pl.BlockSpec((2 * out_channels, 1), lambda bi, ti: (0, 0)),        # bias
                pl.BlockSpec((1, 1, tt), lambda bi, ti: (bi, 0, ti)),              # mask
            ],
            out_specs=[
                pl.BlockSpec((1, out_channels, tt), lambda bi, ti: (bi, 0, ti)),   # m_p
                pl.BlockSpec((1, out_channels, tt), lambda bi, ti: (bi, 0, ti)),   # logs_p
            ],
        ),
        compiler_params=pltpu.CompilerParams(
            dimension_semantics=("parallel", "parallel"),
            vmem_limit_bytes=vmem_limit,
        ),
        cost_estimate=cost,
    )(x_c, w, b, mask_c)

    return m_p, logs_p


def _reference(x, x_mask, weight, bias, out_channels, compute_dtype):
    # Same math as the kernel: inputs rounded to compute dtype, f32 matmul
    # accumulation, bias added before masking (matches Conv1d(x) * mask).
    xb = x.astype(compute_dtype).astype(jnp.float32)
    wb = weight.astype(compute_dtype).astype(jnp.float32)
    stats = (jnp.einsum("oc,bct->bot", wb, xb,
                        precision=jax.lax.Precision.HIGHEST)
             + bias[None, :, None]) * x_mask
    return jnp.split(stats, 2, axis=1)


if __name__ == "__main__":
    key = jax.random.PRNGKey(0)
    kx, km, kw, kb, kx2, km2 = jax.random.split(key, 6)

    B = 2
    hidden_channels = 32
    out_channels = 8

    weight = jax.random.normal(
        kw, (2 * out_channels, hidden_channels), dtype=jnp.float32) * 0.1
    bias = jax.random.normal(kb, (2 * out_channels,), dtype=jnp.float32) * 0.1

    # --- Case 1: tiny T, single full-extent time tile ---
    T1 = 16
    x1 = jax.random.normal(kx, (B, hidden_channels, T1), dtype=jnp.float32)
    mask1 = (jax.random.uniform(km, (B, 1, T1)) > 0.25).astype(jnp.float32)

    m1, l1 = projection(x1, mask1, weight, bias, out_channels)
    m1 = jax.block_until_ready(m1)
    l1 = jax.block_until_ready(l1)

    m1_ref, l1_ref = _reference(x1, mask1, weight, bias, out_channels, jnp.bfloat16)
    assert m1.shape == (B, out_channels, T1) and l1.shape == (B, out_channels, T1)
    assert jnp.allclose(m1, m1_ref, atol=1e-3, rtol=1e-3), "case1 m_p mismatch"
    assert jnp.allclose(l1, l1_ref, atol=1e-3, rtol=1e-3), "case1 logs_p mismatch"

    # --- Case 2: ragged T with explicit 128-wide tiles (pad-free tail path) ---
    T2 = 200
    x2 = jax.random.normal(kx2, (B, hidden_channels, T2), dtype=jnp.float32)
    mask2 = (jax.random.uniform(km2, (B, 1, T2)) > 0.25).astype(jnp.float32)

    m2, l2 = projection(x2, mask2, weight, bias, out_channels, time_tile=128)
    m2 = jax.block_until_ready(m2)
    l2 = jax.block_until_ready(l2)

    m2_ref, l2_ref = _reference(x2, mask2, weight, bias, out_channels, jnp.bfloat16)
    assert m2.shape == (B, out_channels, T2) and l2.shape == (B, out_channels, T2)
    assert jnp.allclose(m2, m2_ref, atol=1e-3, rtol=1e-3), "case2 m_p mismatch"
    assert jnp.allclose(l2, l2_ref, atol=1e-3, rtol=1e-3), "case2 logs_p mismatch"

    # --- Case 3: float32 compute escape hatch (strict Conv1d parity path) ---
    m3, l3 = projection(x2, mask2, weight, bias, out_channels,
                        compute_dtype=jnp.float32)
    m3 = jax.block_until_ready(m3)
    l3 = jax.block_until_ready(l3)

    m3_ref, l3_ref = _reference(x2, mask2, weight, bias, out_channels, jnp.float32)
    assert jnp.allclose(m3, m3_ref, atol=1e-4, rtol=1e-4), "case3 m_p mismatch"
    assert jnp.allclose(l3, l3_ref, atol=1e-4, rtol=1e-4), "case3 logs_p mismatch"

    print("KERNEL_OK")
</pallas_src>

<mosaic_0001>
module attributes {stable_mosaic.version = 11 : i64} {
  func.func @_projection_kernel(%arg0: i32, %arg1: i32, %arg2: memref<1x32x16xbf16, #tpu.memory_space<vmem>>, %arg3: memref<16x32xbf16, #tpu.memory_space<vmem>>, %arg4: memref<16x1xf32, #tpu.memory_space<vmem>>, %arg5: memref<1x1x16xbf16, #tpu.memory_space<vmem>>, %arg6: memref<1x8x16xf32, #tpu.memory_space<vmem>>, %arg7: memref<1x8x16xf32, #tpu.memory_space<vmem>>) attributes {dimension_semantics = [#tpu.dimension_semantics<parallel>, #tpu.dimension_semantics<parallel>], iteration_bounds = array<i64: 2, 1>, scalar_prefetch = 0 : i64, scratch_operands = 0 : i64, tpu.core_type = #tpu.core_type<tc>, window_params = [{transform_indices = @transform_0, window_bounds = array<i64: 1, 32, 16>}, {pipeline_mode = #tpu.pipeline_mode<synchronous>, transform_indices = @transform_1, window_bounds = array<i64: 16, 32>}, {pipeline_mode = #tpu.pipeline_mode<synchronous>, transform_indices = @transform_2, window_bounds = array<i64: 16, 1>}, {transform_indices = @transform_3, window_bounds = array<i64: 1, 1, 16>}, {transform_indices = @transform_4, window_bounds = array<i64: 1, 8, 16>}, {transform_indices = @transform_5, window_bounds = array<i64: 1, 8, 16>}]} {
    %c0 = arith.constant 0 : index
    %c0_0 = arith.constant 0 : index
    %c0_1 = arith.constant 0 : index
    %0 = vector.load %arg2[%c0, %c0_0, %c0_1] : memref<1x32x16xbf16, #tpu.memory_space<vmem>>, vector<1x32x16xbf16>
    %1 = vector.shape_cast %0 : vector<1x32x16xbf16> to vector<32x16xbf16>
    %c0_2 = arith.constant 0 : index
    %c0_3 = arith.constant 0 : index
    %c0_4 = arith.constant 0 : index
    %2 = vector.load %arg5[%c0_2, %c0_3, %c0_4] : memref<1x1x16xbf16, #tpu.memory_space<vmem>>, vector<1x1x16xbf16>
    %3 = vector.shape_cast %2 : vector<1x1x16xbf16> to vector<1x16xbf16>
    %4 = arith.extf %3 : vector<1x16xbf16> to vector<1x16xf32>
    %c0_5 = arith.constant 0 : index
    %c0_6 = arith.constant 0 : index
    %5 = vector.load %arg3[%c0_5, %c0_6] : memref<16x32xbf16, #tpu.memory_space<vmem>>, vector<16x32xbf16>
    %cst = arith.constant dense<0.000000e+00> : vector<16x16xf32>
    %6 = tpu.matmul %5, %1, %cst {dimension_numbers = #tpu.dot_dimension_numbers<[1], [0], [0], [1], [0, 0, 1, 1], [], []>} : vector<16x32xbf16>, vector<32x16xbf16>, vector<16x16xf32> -> vector<16x16xf32>
    %c0_7 = arith.constant 0 : index
    %c0_8 = arith.constant 0 : index
    %7 = vector.load %arg4[%c0_7, %c0_8] : memref<16x1xf32, #tpu.memory_space<vmem>>, vector<16x1xf32>
    %8 = vector.broadcast %7 : vector<16x1xf32> to vector<16x16xf32>
    %9 = arith.addf %6, %8 : vector<16x16xf32>
    %10 = vector.broadcast %4 : vector<1x16xf32> to vector<16x16xf32>
    %11 = arith.mulf %9, %10 : vector<16x16xf32>
    %12 = vector.extract_strided_slice %11 {offsets = [0, 0], sizes = [8, 16], strides = [1, 1]} : vector<16x16xf32> to vector<8x16xf32>
    %c0_9 = arith.constant 0 : index
    %c0_10 = arith.constant 0 : index
    %c0_11 = arith.constant 0 : index
    %13 = vector.load %arg6[%c0_9, %c0_10, %c0_11] : memref<1x8x16xf32, #tpu.memory_space<vmem>>, vector<1x8x16xf32>
    %14 = vector.shape_cast %13 : vector<1x8x16xf32> to vector<8x16xf32>
    %15 = vector.shape_cast %12 : vector<8x16xf32> to vector<1x8x16xf32>
    tpu.vector_store %arg6[%c0_9, %c0_10, %c0_11], %15 {strides = array<i32>} : memref<1x8x16xf32, #tpu.memory_space<vmem>>, vector<1x8x16xf32>,
    %16 = vector.extract_strided_slice %11 {offsets = [8, 0], sizes = [8, 16], strides = [1, 1]} : vector<16x16xf32> to vector<8x16xf32>
    %c0_12 = arith.constant 0 : index
    %c0_13 = arith.constant 0 : index
    %c0_14 = arith.constant 0 : index
    %17 = vector.load %arg7[%c0_12, %c0_13, %c0_14] : memref<1x8x16xf32, #tpu.memory_space<vmem>>, vector<1x8x16xf32>
    %18 = vector.shape_cast %17 : vector<1x8x16xf32> to vector<8x16xf32>
    %19 = vector.shape_cast %16 : vector<8x16xf32> to vector<1x8x16xf32>
    tpu.vector_store %arg7[%c0_12, %c0_13, %c0_14], %19 {strides = array<i32>} : memref<1x8x16xf32, #tpu.memory_space<vmem>>, vector<1x8x16xf32>,
    return
  }
  func.func @transform_0(%arg0: i32, %arg1: i32) -> (i32, i32, i32) {
    %c0_i32 = arith.constant 0 : i32
    %c0_i32_0 = arith.constant 0 : i32
    return %arg0, %c0_i32, %arg1 : i32, i32, i32
  }
  func.func @transform_1(%arg0: i32, %arg1: i32) -> (i32, i32) {
    %c0_i32 = arith.constant 0 : i32
    %c0_i32_0 = arith.constant 0 : i32
    %c0_i32_1 = arith.constant 0 : i32
    return %c0_i32, %c0_i32_0 : i32, i32
  }
  func.func @transform_2(%arg0: i32, %arg1: i32) -> (i32, i32) {
    %c0_i32 = arith.constant 0 : i32
    %c0_i32_0 = arith.constant 0 : i32
    %c0_i32_1 = arith.constant 0 : i32
    return %c0_i32, %c0_i32_0 : i32, i32
  }
  func.func @transform_3(%arg0: i32, %arg1: i32) -> (i32, i32, i32) {
    %c0_i32 = arith.constant 0 : i32
    %c0_i32_0 = arith.constant 0 : i32
    return %arg0, %c0_i32, %arg1 : i32, i32, i32
  }
  func.func @transform_4(%arg0: i32, %arg1: i32) -> (i32, i32, i32) {
    %c0_i32 = arith.constant 0 : i32
    %c0_i32_0 = arith.constant 0 : i32
    return %arg0, %c0_i32, %arg1 : i32, i32, i32
  }
  func.func @transform_5(%arg0: i32, %arg1: i32) -> (i32, i32, i32) {
    %c0_i32 = arith.constant 0 : i32
    %c0_i32_0 = arith.constant 0 : i32
    return %arg0, %c0_i32, %arg1 : i32, i32, i32
  }
}

</mosaic_0001>

<bundles_post_ra>
// kernel: tpu_custom_call.1
= control target key start
LH: loop header
LB: loop body
LE: loop exit
PB: predicated region body
PF: predicated region fallthrough
CT: control target
= control target key end

     0   :  { %11 = vsyncpa [#allocation3], 0  ;;  %s939_s0 = inlined_call_operand.vmem [shape: bf16[2,32,16], index: 0, kind: input, shape index: {}]   ;;  %s940_s1 = inlined_call_operand.vmem [shape: bf16[16,32], index: 1, kind: input, shape index: {}]   ;;  %s941_s2 = inlined_call_operand.vmem [shape: f32[16,1], index: 2, kind: input, shape index: {}]   ;;  %s942_s3 = inlined_call_operand.vmem [shape: bf16[2,1,16], index: 3, kind: input, shape index: {}]   ;;  %s943_s4 = inlined_call_operand.hbm [shape: f32[2,8,16], index: 4, kind: output, shape index: {0}]   ;;  %s944_s5 = inlined_call_operand.hbm [shape: f32[2,8,16], index: 5, kind: output, shape index: {1}]  }
   0x1   :  { %13 = vsyncpa [#allocation3 + $0x1], 0 }
   0x2   :  { %14 = vsyncpa [#allocation5], 0 }
   0x3   :  { %16 = vsyncpa [#allocation5 + $0x1], 0  ;;  %s776_s18 = smov 0   ;;  %s778_s19 = smov 0  }
   0x4   :  { %s780_s20 = smov 0   ;;  %s782_s21 = smov 0  }
   0x5   :  { %s784_s22 = smov 0   ;;  %s786_s23 = smov 0  }
   0x6 LB: > { %s531_s24 = sadd.s32 4294967295, %s739_s23   ;;  %s532_s25 = sadd.s32 4294967294, %s739_s23   ;;  %s739_s23 = sphi %s786_s23, %s22_s23   ;;  %s735_s22 = sphi %s784_s22, %s951_s22   ;;  %s731_s21 = sphi %s782_s21, %s950_s21   ;;  %s727_s20 = sphi %s780_s20, %s949_s20   ;;  %s723_s19 = sphi %s778_s19, %s948_s19   ;;  %s719_s18 = sphi %s776_s18, %s947_s18  }
   0x7   : > { %s34_s26 = sadd.s32 1, %s735_s22  ;;  %s141_s27 = sadd.s32 1, %s727_s20 }
   0x8   : > { %p36_p0 = scmp.ge.s32.totalorder %s34_s26, 2  ;;  %p151_p1 = scmp.ne.s32.totalorder %s727_s20, %s723_s19 }
   0x9   : > { %p152_p2 = scmp.eq.s32.totalorder %s531_s24, 1  ;;  %p157_p3 = scmp.ne.s32.totalorder %s723_s19, %s719_s18 }
   0xa   : > { %s953_s26 = smov (%p36_p0, %s34_s26), 0  ;;  %p158_p5 = scmp.eq.s32.totalorder %s532_s25, 1 }
   0xb   : > { %p816_p4 = por %p152_p2, %p151_p1  ;;  %s136_s29 = ssub.s32 %s735_s22, %s953_s26 }
   0xc   : > { %p535_p6 = scmp.ge.s32.totalorder %s739_s23, 1  ;;  %p139_p7 = scmp.eq.s32.totalorder %s136_s29, 0 }
   0xd   : > { %p823_p8 = por %p158_p5, %p157_p3  ;;  %p230_p9 = scmp.lt.s32.totalorder %s739_s23, 3 }
   0xe   : > { %s829_s6 = scalar_select %p139_p7, %s727_s20, %s141_s27  }
   0xf   : > { %p231_p10 = pnand %p535_p6, %p230_p9 }
  0x10   : > { %p272_p11 = scmp.lt.s32.totalorder (!%p231_p10), %s731_s21, 1  ;;  %v741_v0 = vmov (!%p231_p10), 0.0   ;;  %vm742_vm0 = vmmov (!%p231_p10), 0   ;;  %v295_v1 = vld [vmem:[%s941_s2] sm:$0xff] (!%p231_p10)  ;;  %v743_v2 = vmov (!%p231_p10), 0   ;;  %v296_v3 = vld [vmem:[%s941_s2 + $0x8] sm:$0xff] (!%p231_p10)  ;;  %v369_v7 = vlaneseq (!%p231_p10) }
  0x11   : > { %234 = sbr.rel (%p231_p10) target bundleno = 289 (0x121), region = 36  ;;  %554 = vmatprep.subr.bf16.mxu0 (!%p231_p10), %v741_v0  ;;  %558 = vmatprep.mubr.msk.bf16.mxu0 (!%p231_p10), %vm742_vm0, %v741_v0  ;;  %v628_v6 = vld [vmem:[%s940_s1] sm:$0xff] (!%p231_p10)   ;;  %vm324_vm1 = vcmask (!%p231_p10), 261120   ;;  %s849_s29 = sand.u32 (!%p231_p10), 1, %s723_s19   ;;  %vm375_vm2 = vcmask (!%p231_p10), 130048  }
  0x12   : > { %625 = vset.pattern.permute.xlu0 (!%p231_p10), %v743_v2  ;;  %v370_v8 = vshrl.u32 (!%p231_p10), %v369_v7, 7  ;;  %s536_s7 = sshll.u32 (!%p231_p10), %s849_s29, 3  ;;  %s546_s8 = sshll.u32 (!%p231_p10), %s731_s21, 7 }
  0x13   : > { %299 = vperm.xlu0 (!%p231_p10), %625, %v295_v1   ;;  %s867_s17 = scalar_lea.hbm (!%p231_p10), %s944_s5, %s546_s8  ;;  %s379_s24 = scalar_lea.sflag (!%p231_p10), [#allocation3], %s849_s29 }
  0x14   : > { %v371_v11 = vsub.s32 (!%p231_p10), 0, %v370_v8 }
  0x17   : > { %304 = vperm.xlu0 (!%p231_p10), %625, %v296_v3  }
  0x18   : > { %s273_s9 = scalar_select %p272_p11, %s731_s21, 1 }
  0x19   : > { %s859_s21 = scalar_lea.hbm %s943_s4, %s546_s8 }
  0x1a   : > { %s550_s10 = sshll.u32 %s273_s9, 4  ;;  %s285_s27 = scalar_lea.vmem %s942_s3, %s273_s9 }
  0x1b   : > { %s279_s15 = scalar_lea.vmem %s939_s0, %s550_s10  ;;  %v291_v9 = vld [vmem:[%s285_s27] sm:$0x1]  ;;  %s264_s10 = scalar_lea.vmem [#allocation2], %s536_s7 }
  0x1c   : > { %v626_v4 = vld [vmem:[%s279_s15] sm:$0xff]   ;;  %v627_v5 = vld [vmem:[%s279_s15 + $0x8] sm:$0xff]   ;;  %v292_v10 = vunpack.c.l.bf16 %v291_v9  ;;  %s398_s11 = sshll.u32 %s264_s10, 4  ;;  %s853_s9 = scalar_lea.vmem [#allocation4], %s536_s7  ;;  %s861_s11 = int_to_ptr.vmem [resolvable:$true] %s398_s11 }
  0x1d   : > { %555 = vmatpush3.bf16.msra.mxu0 %v626_v4  ;;  %s412_s12 = sshll.u32 %s853_s9, 4  ;;  %s629_s25 = scalar_lea.vmem %s861_s11, 128  ;;  %s869_s12 = int_to_ptr.vmem [resolvable:$true] %s412_s12 }
  0x1e   : > { %556 = vmatprep.subr.bf16.mxu0 %v741_v0  ;;  %v372_v13 = vrot.slane %v292_v10, %v371_v11  ;;  %p630_p12 = scmp.ne.s32.totalorder %s861_s11, %s629_s25  ;;  %s744_s27 = smov [#allocation2]  }
  0x1f   : > { %s633_s7 = sshll.u32 %s744_s27, 4  ;;  %s634_s7 = int_to_ptr.vmem [resolvable:$false] %s633_s7 }
  0x20   : > { %p631_p13 = pnand %p630_p12, %p816_p4  ;;  %s635_s13 = scalar_lea.vmem %s634_s7, 256 }
  0x21   : > { %557 = vmatpush3.bf16.msra.mxu0 %v627_v5  ;;  %p636_p1 = scmp.lt.s32.totalorder %s861_s11, %s634_s7  ;;  %p637_p2 = scmp.lt.s32.totalorder %s635_s13, %s629_s25 }
  0x22   : > { %p632_p0 = pneg %p631_p13 }
  0x23   : > { %p638_p3 = por %p637_p2, %p636_p1 }
  0x24   : > { %559 = vmatmul.mubr.msk.bf16.vlgmr.msra.gmra.mrb[0].mxu0 %vm324_vm1, %v628_v6 }
  0x25   : > { %p639_p5 = pnand %p638_p3, %p632_p0 }
  0x92   : > { %v300_v12 = vpop.permute.xlu0 %299 }
  0x96   : > { %v305_v17 = vpop.permute.xlu0 %304 }
  0xf7   : > { %v362_v14 = vpop.f32.mrb[0].mxu0 }
  0xf8   : > { %v363_v15 = vadd.f32 %v362_v14, %v300_v12  ;;  %v560_v16 = vpop.f32.mrb[1].mxu0 }
  0xf9   : > { %v365_v18 = vpop.f32.mrb[2].mxu0 }
  0xfa   : > { %v373_v19 = vmul.f32 %v372_v13, %v363_v15  ;;  %v366_v20 = vadd.f32 %v365_v18, %v305_v17  ;;  %v561_v21 = vpop.f32.mrb[3].mxu0 }
  0xfc   : > { %v374_v22 = vmul.f32 %v372_v13, %v366_v20  ;;  %376 = vst.msk [vmem:[%s264_s10] sm:$0xff] %vm375_vm2, %v373_v19 }
  0xfd   : > { %642 = shalt.err (!%p639_p5)
}
  0xfe   : > { %s643_s8 = scalar_lea.hbm %s859_s21, 128  ;;  %s647_s15 = scalar_lea.hbm %s943_s4, 256 }
  0xff   : > { %p644_p6 = scmp.ne.s32.totalorder %s859_s21, %s643_s8  ;;  %p648_p10 = scmp.lt.u32.totalorder %s859_s21, %s943_s4 }
 0x100   : > { %p649_p11 = scmp.lt.u32.totalorder %s647_s15, %s643_s8  ;;  %p651_p13 = scmp.lt.u32.totalorder %s643_s8, %s859_s21 }
 0x101   : > { %p645_p7 = pnand %p644_p6, %p816_p4 }
 0x102   : > { %p650_p12 = por %p649_p11, %p648_p10 }
 0x103   : > { %p646_p9 = pneg %p645_p7 }
 0x104   : > { %p652_p0 = por %p651_p13, %p650_p12 }
 0x106   : > { %p653_p1 = pnand %p652_p0, %p646_p9 }
 0x108   : > { %656 = shalt.err (!%p653_p1)
}
 0x109   : > { %562 = dma.vmem_to_hbm [thread:$0]  (%p816_p4), %s861_s11, 128, %s859_s21, %s379_s24   ;;  %377 = vst.msk [vmem:[%s853_s9] sm:$0xff] %vm375_vm2, %v374_v22 }
 0x10a   : > { %s384_s25 = scalar_lea.sflag [#allocation5], %s849_s29  ;;  %s657_s7 = scalar_lea.vmem %s869_s12, 128 }
 0x10b   : > { %p658_p2 = scmp.ne.s32.totalorder %s869_s12, %s657_s7  ;;  %s745_s13 = smov [#allocation4]  }
 0x10c   : > { %s661_s8 = sshll.u32 %s745_s13, 4  ;;  %s662_s8 = int_to_ptr.vmem [resolvable:$false] %s661_s8 }
 0x10d   : > { %p659_p3 = pnand %p658_p2, %p816_p4  ;;  %s663_s10 = scalar_lea.vmem %s662_s8, 256 }
 0x10e   : > { %p664_p6 = scmp.lt.s32.totalorder %s869_s12, %s662_s8  ;;  %p665_p7 = scmp.lt.s32.totalorder %s663_s10, %s657_s7 }
 0x10f   : > { %p660_p5 = pneg %p659_p3 }
 0x110   : > { %p666_p9 = por %p665_p7, %p664_p6 }
 0x112   : > { %p667_p10 = pnand %p666_p9, %p660_p5 }
 0x114   : > { %670 = shalt.err (!%p667_p10)
}
 0x115   : > { %s671_s29 = scalar_lea.hbm %s867_s17, 128  ;;  %s675_s21 = scalar_lea.hbm %s944_s5, 256 }
 0x116   : > { %p672_p11 = scmp.ne.s32.totalorder %s867_s17, %s671_s29  ;;  %p676_p0 = scmp.lt.u32.totalorder %s867_s17, %s944_s5 }
 0x117   : > { %p677_p1 = scmp.lt.u32.totalorder %s675_s21, %s671_s29  ;;  %p679_p3 = scmp.lt.u32.totalorder %s671_s29, %s867_s17 }
 0x118   : > { %p673_p12 = pnand %p672_p11, %p816_p4 }
 0x119   : > { %p678_p2 = por %p677_p1, %p676_p0 }
 0x11a   : > { %p674_p13 = pneg %p673_p12 }
 0x11b   : > { %p680_p5 = por %p679_p3, %p678_p2 }
 0x11d   : > { %p681_p6 = pnand %p680_p5, %p674_p13 }
 0x11f   : > { %684 = shalt.err (!%p681_p6)
}
 0x120   : > { %563 = dma.vmem_to_hbm [thread:$0]  (%p816_p4), %s869_s12, 128, %s867_s17, %s384_s25  }
 0x121 PF: > { %p573_p7 = scmp.ge.s32.totalorder %s739_s23, 2  ;;  %s424_s15 = sand.u32 1, %s719_s18  }
 0x122   : > { %s425_s16 = scalar_lea.sflag [#allocation3], %s424_s15 }
 0x123   : > { %p567_p9 = pnand %p573_p7, %p823_p8 }
 0x125   : > { %710 = dma.done.wait (!%p567_p9), %s425_s16, 128  }
 0x126   : > { %712 = vsyncadd (!%p567_p9), %s425_s16, 4294967168  ;;  %s434_s27 = scalar_lea.sflag [#allocation5], %s424_s15 }
 0x127   : > { %714 = dma.done.wait (!%p567_p9), %s434_s27, 128  }
 0x128   : > { %716 = vsyncadd (!%p567_p9), %s434_s27, 4294967168  ;;  %s22_s23 = sadd.s32 1, %s739_s23   ;;  %s947_s18 = smov %s723_s19 }
 0x129   : > { %p19_p10 = scmp.ge.s32.totalorder %s22_s23, 4   ;;  %s948_s19 = smov %s727_s20 }
 0x12a   : > { %s949_s20 = smov %s829_s6  ;;  %s950_s21 = smov %s735_s22 }
 0x12b   : > { %s951_s22 = smov %s953_s26  ;;  %21 = sbr.rel (!%p19_p10) target bundleno = 6 (0x6), region = 91 }
 0x132   :  { %439 = vsyncpa [#allocation3], 1 }
 0x133   :  { %441 = vsyncpa [#allocation3 + $0x1], 1 }
 0x134   :  { %442 = vsyncpa [#allocation5], 1 }
 0x135   :  { %444 = vsyncpa [#allocation5 + $0x1], 1 }

</bundles_post_ra>
